<compile_context>
chip_gen: v7x
topology: tpu7x:2x2x1
jax: 0.10.0
libtpu: 0.0.40
codegen_flags: <defaults>
</compile_context>

<pallas_src>
import functools

import jax
import jax.numpy as jnp
from jax.experimental import pallas as pl
from jax.experimental.pallas import tpu as pltpu


def _round_up(x, m):
    return (x + m - 1) // m * m


def _pick_tile(target, dim, align):
    """Largest multiple of `align` that is <= target (and >= align) and divides
    round_up(dim, align) exactly, so padding never exceeds align-1 elements."""
    dim_a = _round_up(dim, align)
    t = min(_round_up(max(target, align), align), dim_a)
    t = max(align, (t // align) * align)
    while dim_a % t != 0:
        t -= align
    return t, dim_a


def _min_sublane(dtype):
    # f32 -> 8, bf16 -> 16, int8/fp8 -> 32 sublane minimum for the M tile.
    return {4: 8, 2: 16, 1: 32}.get(jnp.dtype(dtype).itemsize, 8)


def _vmem_cap_bytes():
    try:
        info = pltpu.get_tpu_info()
        phys = int(getattr(info, "vmem_capacity_bytes", 0)) or (64 << 20)
    except Exception:
        phys = 64 << 20  # conservative: v7x per-TensorCore VMEM
    return (phys * 3) // 4


def prepare_weight(quantized_weight, outliers, updates, compute_dtype=None):
    """One-off weight prep: W_eff = outliers * updates + quantized_weight,
    transposed to [K, N].  For repeated inference call this once at weight-load
    time and reuse the result."""
    w = outliers * updates + quantized_weight
    if compute_dtype is not None:
        w = w.astype(compute_dtype)
    return w.T  # [K, N]


def _linear_kernel(x_ref, wt_ref, bias_ref, o_ref, acc_ref):
    k = pl.program_id(2)

    @pl.when(k == 0)
    def _():
        acc_ref[...] = jnp.zeros_like(acc_ref)

    # Canonical (tm, tk) x (tk, tn) MXU matmul with f32 accumulator.
    acc_ref[...] += jnp.dot(x_ref[...], wt_ref[...],
                            preferred_element_type=jnp.float32)

    @pl.when(k == pl.num_programs(2) - 1)
    def _():
        o_ref[...] = (acc_ref[...] + bias_ref[...]).astype(o_ref.dtype)


@functools.partial(jax.jit, static_argnames=("tm", "tn", "tk", "compute_dtype"))
def outlier_quant_linear(x, quantized_weight, outliers, updates, bias=None,
                         *, tm=256, tn=512, tk=1024, compute_dtype=None):
    """x: [..., K]; weights: [N, K] (PyTorch linear layout); bias: [N] -> [..., N]."""
    orig_shape = x.shape
    K = orig_shape[-1]
    N = quantized_weight.shape[0]
    out_dtype = x.dtype

    # One-off effective-weight reconstruction + transpose (single weight stream
    # for the matmul kernel instead of three).
    w_t = prepare_weight(quantized_weight, outliers, updates, compute_dtype)   # [K, N]

    x2d = x.reshape(-1, K)
    if compute_dtype is not None:
        x2d = x2d.astype(compute_dtype)
    M = x2d.shape[0]

    if bias is None:
        bias = jnp.zeros((N,), dtype=jnp.float32)

    # Tiles: aligned divisors of the aligned problem dims (pad <= align-1 elems).
    # Note (v7x megacore): for decode-sized M pick a smaller tn so Np//tn >= 2.
    min_m = _min_sublane(x2d.dtype)
    tm, Mp = _pick_tile(tm, M, min_m)
    tn, Np = _pick_tile(tn, N, 128)
    tk, Kp = _pick_tile(tk, K, 128)

    # Zero-pad (tiny); zero rows/cols contribute nothing to the reduction.
    if (Mp, Kp) != (M, K):
        x2d = jnp.pad(x2d, ((0, Mp - M), (0, Kp - K)))
    if (Kp, Np) != (K, N):
        w_t = jnp.pad(w_t, ((0, Kp - K), (0, Np - N)))
    bias2d = bias.reshape(1, N).astype(jnp.float32)
    if Np != N:
        bias2d = jnp.pad(bias2d, ((0, 0), (0, Np - N)))

    # VMEM budget: double-buffered x / w_t / out / bias tiles + f32 accumulator,
    # capped per-generation at 75% of physical VMEM.
    it_x = x2d.dtype.itemsize
    it_w = w_t.dtype.itemsize
    it_o = jnp.dtype(out_dtype).itemsize
    est = 2 * (tm * tk * it_x + tk * tn * it_w + tm * tn * it_o + tn * 4) + tm * tn * 4
    vmem_limit = min(max(int(est * 1.25) + (4 << 20), 16 << 20), _vmem_cap_bytes())

    out = pl.pallas_call(
        _linear_kernel,
        out_shape=jax.ShapeDtypeStruct((Mp, Np), out_dtype),
        grid_spec=pltpu.PrefetchScalarGridSpec(
            num_scalar_prefetch=0,
            grid=(Mp // tm, Np // tn, Kp // tk),
            in_specs=[
                pl.BlockSpec((tm, tk), lambda i, j, k: (i, k)),   # x
                pl.BlockSpec((tk, tn), lambda i, j, k: (k, j)),   # W_eff^T
                pl.BlockSpec((1, tn), lambda i, j, k: (0, j)),    # bias
            ],
            out_specs=pl.BlockSpec((tm, tn), lambda i, j, k: (i, j)),
            scratch_shapes=[pltpu.VMEM((tm, tn), jnp.float32)],
        ),
        compiler_params=pltpu.CompilerParams(
            dimension_semantics=("parallel", "parallel", "arbitrary"),
            vmem_limit_bytes=vmem_limit),
    )(x2d, w_t, bias2d)

    out = out[:M, :N]
    return out.reshape(*orig_shape[:-1], N)


def reference(x, quantized_weight, outliers, updates, bias):
    w = outliers * updates + quantized_weight
    return jnp.einsum("...k,nk->...n", x, w) + bias


if __name__ == "__main__":
    key = jax.random.PRNGKey(0)
    k_x, k_qw, k_mask, k_mag, k_err, k_b = jax.random.split(key, 6)

    batch, seq = 2, 8
    in_features, out_features = 256, 128

    x = jax.random.normal(k_x, (batch, seq, in_features), dtype=jnp.float32)

    # Deterministic synthetic buffers matching the module's __init__ shapes.
    quantized_weight = jax.random.normal(
        k_qw, (out_features, in_features), dtype=jnp.float32) * 0.05
    outlier_mask = (jax.random.uniform(k_mask, (out_features, in_features)) < 0.05
                    ).astype(jnp.float32)
    outliers = outlier_mask * jax.random.normal(
        k_mag, (out_features, in_features), dtype=jnp.float32)
    updates = jax.random.normal(
        k_err, (out_features, in_features), dtype=jnp.float32) * 0.01
    bias = jax.random.normal(k_b, (out_features,), dtype=jnp.float32) * 0.1

    out = outlier_quant_linear(x, quantized_weight, outliers, updates, bias)
    out = jax.block_until_ready(out)

    ref = reference(x, quantized_weight, outliers, updates, bias)
    assert out.shape == (batch, seq, out_features)
    assert jnp.allclose(out, ref, atol=1e-4, rtol=1e-4), (
        float(jnp.max(jnp.abs(out - ref))))

    print("KERNEL_OK")
</pallas_src>

<mosaic_0001>
module attributes {stable_mosaic.version = 11 : i64} {
  func.func @_linear_kernel(%arg0: i32, %arg1: i32, %arg2: i32, %arg3: memref<16x256xf32, #tpu.memory_space<vmem>>, %arg4: memref<256x128xf32, #tpu.memory_space<vmem>>, %arg5: memref<1x128xf32, #tpu.memory_space<vmem>>, %arg6: memref<16x128xf32, #tpu.memory_space<vmem>>, %arg7: memref<16x128xf32, #tpu.memory_space<vmem>>) attributes {dimension_semantics = [#tpu.dimension_semantics<parallel>, #tpu.dimension_semantics<parallel>, #tpu.dimension_semantics<arbitrary>], iteration_bounds = array<i64: 1, 1, 1>, scalar_prefetch = 0 : i64, scratch_operands = 1 : i64, tpu.core_type = #tpu.core_type<tc>, window_params = [{transform_indices = @transform_0, window_bounds = array<i64: 16, 256>}, {transform_indices = @transform_1, window_bounds = array<i64: 256, 128>}, {transform_indices = @transform_2, window_bounds = array<i64: 1, 128>}, {transform_indices = @transform_3, window_bounds = array<i64: 16, 128>}]} {
    %c0_i32 = arith.constant 0 : i32
    %0 = arith.cmpi eq, %arg2, %c0_i32 : i32
    %1 = arith.extui %0 : i1 to i32
    %c0_i32_0 = arith.constant 0 : i32
    %2 = arith.cmpi ne, %1, %c0_i32_0 : i32
    scf.if %2 {
      %cst_10 = arith.constant 0.000000e+00 : f32
      %12 = vector.broadcast %cst_10 : f32 to vector<16x128xf32>
      %c0_11 = arith.constant 0 : index
      %c0_12 = arith.constant 0 : index
      %13 = vector.load %arg7[%c0_11, %c0_12] : memref<16x128xf32, #tpu.memory_space<vmem>>, vector<16x128xf32>
      tpu.vector_store %arg7[%c0_11, %c0_12], %12 {strides = array<i32>} : memref<16x128xf32, #tpu.memory_space<vmem>>, vector<16x128xf32>,
    } else {
    }
    %c0 = arith.constant 0 : index
    %c0_1 = arith.constant 0 : index
    %3 = vector.load %arg7[%c0, %c0_1] : memref<16x128xf32, #tpu.memory_space<vmem>>, vector<16x128xf32>
    %c0_2 = arith.constant 0 : index
    %c0_3 = arith.constant 0 : index
    %4 = vector.load %arg3[%c0_2, %c0_3] : memref<16x256xf32, #tpu.memory_space<vmem>>, vector<16x256xf32>
    %c0_4 = arith.constant 0 : index
    %c0_5 = arith.constant 0 : index
    %5 = vector.load %arg4[%c0_4, %c0_5] : memref<256x128xf32, #tpu.memory_space<vmem>>, vector<256x128xf32>
    %cst = arith.constant dense<0.000000e+00> : vector<16x128xf32>
    %6 = tpu.matmul %4, %5, %cst {dimension_numbers = #tpu.dot_dimension_numbers<[1], [0], [0], [1], [0, 0, 1, 1], [], []>} : vector<16x256xf32>, vector<256x128xf32>, vector<16x128xf32> -> vector<16x128xf32>
    %7 = arith.addf %3, %6 : vector<16x128xf32>
    %c0_6 = arith.constant 0 : index
    %c0_7 = arith.constant 0 : index
    %8 = vector.load %arg7[%c0_6, %c0_7] : memref<16x128xf32, #tpu.memory_space<vmem>>, vector<16x128xf32>
    tpu.vector_store %arg7[%c0_6, %c0_7], %7 {strides = array<i32>} : memref<16x128xf32, #tpu.memory_space<vmem>>, vector<16x128xf32>,
    %c0_i32_8 = arith.constant 0 : i32
    %9 = arith.cmpi eq, %arg2, %c0_i32_8 : i32
    %10 = arith.extui %9 : i1 to i32
    %c0_i32_9 = arith.constant 0 : i32
    %11 = arith.cmpi ne, %10, %c0_i32_9 : i32
    scf.if %11 {
      %c0_10 = arith.constant 0 : index
      %c0_11 = arith.constant 0 : index
      %12 = vector.load %arg7[%c0_10, %c0_11] : memref<16x128xf32, #tpu.memory_space<vmem>>, vector<16x128xf32>
      %c0_12 = arith.constant 0 : index
      %c0_13 = arith.constant 0 : index
      %13 = vector.load %arg5[%c0_12, %c0_13] : memref<1x128xf32, #tpu.memory_space<vmem>>, vector<1x128xf32>
      %14 = vector.broadcast %13 : vector<1x128xf32> to vector<16x128xf32>
      %15 = arith.addf %12, %14 : vector<16x128xf32>
      %c0_14 = arith.constant 0 : index
      %c0_15 = arith.constant 0 : index
      %16 = vector.load %arg6[%c0_14, %c0_15] : memref<16x128xf32, #tpu.memory_space<vmem>>, vector<16x128xf32>
      tpu.vector_store %arg6[%c0_14, %c0_15], %15 {strides = array<i32>} : memref<16x128xf32, #tpu.memory_space<vmem>>, vector<16x128xf32>,
    } else {
    }
    return
  }
  func.func @transform_0(%arg0: i32, %arg1: i32, %arg2: i32) -> (i32, i32) {
    %c0_i32 = arith.constant 0 : i32
    return %arg0, %arg2 : i32, i32
  }
  func.func @transform_1(%arg0: i32, %arg1: i32, %arg2: i32) -> (i32, i32) {
    %c0_i32 = arith.constant 0 : i32
    return %arg2, %arg1 : i32, i32
  }
  func.func @transform_2(%arg0: i32, %arg1: i32, %arg2: i32) -> (i32, i32) {
    %c0_i32 = arith.constant 0 : i32
    %c0_i32_0 = arith.constant 0 : i32
    return %c0_i32, %arg1 : i32, i32
  }
  func.func @transform_3(%arg0: i32, %arg1: i32, %arg2: i32) -> (i32, i32) {
    %c0_i32 = arith.constant 0 : i32
    return %arg0, %arg1 : i32, i32
  }
}

</mosaic_0001>

<bundles_post_ra>
// kernel: outlier_quant_linear.1
= control target key start
LH: loop header
LB: loop body
LE: loop exit
PB: predicated region body
PF: predicated region fallthrough
CT: control target
= control target key end

     0   :  { %s430_s0 = inlined_call_operand.vmem [shape: f32[16,256], index: 0, kind: input, shape index: {}]   ;;  %s431_s1 = inlined_call_operand.vmem [shape: f32[256,128], index: 1, kind: input, shape index: {}]   ;;  %s432_s2 = inlined_call_operand.vmem [shape: f32[1,128], index: 2, kind: input, shape index: {}]   ;;  %s433_s3 = inlined_call_operand.hbm [shape: f32[16,128], index: 3, kind: output, shape index: {}]  }
   0x1   :  { %v43_v0 = vld [vmem:[%s431_s1 + $0x80] sm:$0xff]  ;;  %v44_v1 = vld [vmem:[%s431_s1 + $0x88] sm:$0xff]  ;;  %v45_v5 = vld [vmem:[%s431_s1 + $0x90] sm:$0xff] }
   0x2   :  { %v27_v2 = vld [vmem:[%s431_s1] sm:$0xff]  ;;  %v209_v3 = vpack.c.bf16 %v44_v1, %v43_v0  ;;  %v28_v4 = vld [vmem:[%s431_s1 + $0x8] sm:$0xff]  ;;  %v46_v6 = vld [vmem:[%s431_s1 + $0x98] sm:$0xff] }
   0x3   :  { %v211_v7 = vpack.c.bf16 %v28_v4, %v27_v2  ;;  %v213_v8 = vpack.c.bf16 %v46_v6, %v45_v5  ;;  %v29_v9 = vld [vmem:[%s431_s1 + $0x10] sm:$0xff]  ;;  %v30_v10 = vld [vmem:[%s431_s1 + $0x18] sm:$0xff]  ;;  %v47_v11 = vld [vmem:[%s431_s1 + $0xa0] sm:$0xff] }
   0x4   :  { %210 = vmatprep.subr.bf16.mxu0 %v209_v3  ;;  %241 = vmatprep.subr.bf16.mxu1 %v209_v3  ;;  %v48_v12 = vld [vmem:[%s431_s1 + $0xa8] sm:$0xff]  ;;  %v215_v13 = vpack.c.bf16 %v30_v10, %v29_v9  ;;  %v31_v15 = vld [vmem:[%s431_s1 + $0x20] sm:$0xff]  ;;  %v49_v17 = vld [vmem:[%s431_s1 + $0xb0] sm:$0xff] }
   0x5   :  { %212 = vmatpush3.bf16.msra.mxu0 %v211_v7  ;;  %249 = vmatpush3.bf16.msra.mxu1 %v211_v7  ;;  %v217_v14 = vpack.c.bf16 %v48_v12, %v47_v11  ;;  %v32_v16 = vld [vmem:[%s431_s1 + $0x28] sm:$0xff]  ;;  %v50_v18 = vld [vmem:[%s431_s1 + $0xb8] sm:$0xff]  ;;  %v33_v21 = vld [vmem:[%s431_s1 + $0x30] sm:$0xff] }
   0x6   :  { %214 = vmatprep.subr.bf16.mxu0 %v213_v8  ;;  %242 = vmatprep.subr.bf16.mxu1 %v213_v8  ;;  %v219_v19 = vpack.c.bf16 %v32_v16, %v31_v15  ;;  %v221_v20 = vpack.c.bf16 %v50_v18, %v49_v17  ;;  %v34_v22 = vld [vmem:[%s431_s1 + $0x38] sm:$0xff]  ;;  %v51_v23 = vld [vmem:[%s431_s1 + $0xc0] sm:$0xff]  ;;  %v52_v24 = vld [vmem:[%s431_s1 + $0xc8] sm:$0xff] }
   0x7   :  { %v24_v25 = vld [vmem:[%s430_s0 + $0x8] sm:$0xff]  ;;  %v26_v26 = vld [vmem:[%s430_s0 + $0x18] sm:$0xff]  ;;  %v223_v27 = vpack.c.bf16 %v34_v22, %v33_v21 }
   0x8   :  { %123 = vmatprep.mubr.f32.mxu0 %v24_v25 }
   0x9   :  { %216 = vmatpush3.bf16.msra.mxu0 %v215_v13  ;;  %250 = vmatpush3.bf16.msra.mxu1 %v215_v13 }
   0xa   :  { %218 = vmatprep.subr.bf16.mxu0 %v217_v14  ;;  %243 = vmatprep.subr.bf16.mxu1 %v217_v14 }
   0xd   :  { %220 = vmatpush3.bf16.msra.mxu0 %v219_v19  ;;  %251 = vmatpush3.bf16.msra.mxu1 %v219_v19 }
   0xe   :  { %8 = vsyncpa [#allocation4], 0  ;;  %222 = vmatprep.subr.bf16.mxu0 %v221_v20  ;;  %244 = vmatprep.subr.bf16.mxu1 %v221_v20  ;;  %v225_v28 = vpack.c.bf16 %v52_v24, %v51_v23  ;;  %v35_v29 = vld [vmem:[%s431_s1 + $0x40] sm:$0xff]  ;;  %v36_v30 = vld [vmem:[%s431_s1 + $0x48] sm:$0xff] }
   0xf   :  { %v53_v31 = vld [vmem:[%s431_s1 + $0xd0] sm:$0xff]  ;;  %v54_v32 = vld [vmem:[%s431_s1 + $0xd8] sm:$0xff]  ;;  %128 = vmatprep.mubr.f32.mxu1 %v26_v26  ;;  %v227_v33 = vpack.c.bf16 %v36_v30, %v35_v29  ;;  %v55_v37 = vld [vmem:[%s431_s1 + $0xe0] sm:$0xff] }
  0x10   :  { %v229_v34 = vpack.c.bf16 %v54_v32, %v53_v31  ;;  %v37_v35 = vld [vmem:[%s431_s1 + $0x50] sm:$0xff]  ;;  %v38_v36 = vld [vmem:[%s431_s1 + $0x58] sm:$0xff]  ;;  %v56_v38 = vld [vmem:[%s431_s1 + $0xe8] sm:$0xff] }
  0x11   :  { %224 = vmatpush3.bf16.msra.mxu0 %v223_v27  ;;  %252 = vmatpush3.bf16.msra.mxu1 %v223_v27  ;;  %v231_v39 = vpack.c.bf16 %v38_v36, %v37_v35  ;;  %v233_v40 = vpack.c.bf16 %v56_v38, %v55_v37  ;;  %v39_v41 = vld [vmem:[%s431_s1 + $0x60] sm:$0xff]  ;;  %v40_v42 = vld [vmem:[%s431_s1 + $0x68] sm:$0xff]  ;;  %v57_v43 = vld [vmem:[%s431_s1 + $0xf0] sm:$0xff] }
  0x12   :  { %226 = vmatprep.subr.bf16.mxu0 %v225_v28  ;;  %245 = vmatprep.subr.bf16.mxu1 %v225_v28  ;;  %v58_v44 = vld [vmem:[%s431_s1 + $0xf8] sm:$0xff]  ;;  %v235_v45 = vpack.c.bf16 %v40_v42, %v39_v41  ;;  %v41_v47 = vld [vmem:[%s431_s1 + $0x70] sm:$0xff]  ;;  %v23_v50 = vld [vmem:[%s430_s0] sm:$0xff] }
  0x13   :  { %v237_v46 = vpack.c.bf16 %v58_v44, %v57_v43  ;;  %v42_v48 = vld [vmem:[%s431_s1 + $0x78] sm:$0xff]  ;;  %v25_v51 = vld [vmem:[%s430_s0 + $0x10] sm:$0xff]  ;;  %s284_s1 = smov [#allocation3]   ;;  %v170_v55 = vld [vmem:[%s432_s2] ss:$0 sm:$0xff] }
  0x14   :  { %v239_v49 = vpack.c.bf16 %v42_v48, %v41_v47  ;;  %s159_s30 = sshll.u32 %s284_s1, 4  ;;  %s160_s30 = int_to_ptr.vmem [resolvable:$true] %s159_s30 }
  0x15   :  { %228 = vmatpush3.bf16.msra.mxu0 %v227_v33  ;;  %253 = vmatpush3.bf16.msra.mxu1 %v227_v33  ;;  %s260_s0 = scalar_lea.vmem %s160_s30, 256  ;;  %p265_p1 = scmp.lt.s32.totalorder %s160_s30, %s160_s30 }
  0x16   :  { %230 = vmatprep.subr.bf16.mxu0 %v229_v34  ;;  %246 = vmatprep.subr.bf16.mxu1 %v229_v34  ;;  %p261_p0 = scmp.ne.s32.totalorder %s160_s30, %s260_s0  ;;  %p266_p2 = scmp.lt.s32.totalorder %s260_s0, %s260_s0 }
  0x18   :  { %p267_p3 = por %p266_p2, %p265_p1 }
  0x19   :  { %232 = vmatpush3.bf16.msra.mxu0 %v231_v39  ;;  %254 = vmatpush3.bf16.msra.mxu1 %v231_v39 }
  0x1a   :  { %234 = vmatprep.subr.bf16.mxu0 %v233_v40  ;;  %247 = vmatprep.subr.bf16.mxu1 %v233_v40  ;;  %p268_p4 = pnand %p267_p3, %p261_p0 }
  0x1d   :  { %236 = vmatpush3.bf16.msra.mxu0 %v235_v45  ;;  %255 = vmatpush3.bf16.msra.mxu1 %v235_v45 }
  0x1e   :  { %238 = vmatprep.subr.bf16.mxu0 %v237_v46  ;;  %248 = vmatprep.subr.bf16.mxu1 %v237_v46 }
  0x21   :  { %240 = vmatpush3.bf16.msra.mxu0 %v239_v49  ;;  %256 = vmatpush3.bf16.msra.mxu1 %v239_v49 }
  0x24   :  { %124 = vmatmul.mubr.f32.vlgmr.msra.gmra.mrb[0].mxu0 %v23_v50  ;;  %129 = vmatmul.mubr.f32.vlgmr.msra.gmra.mrb[0].mxu1 %v25_v51 }
  0xf7   :  { %v203_v52 = vpop.f32.mrb[0].mxu0  ;;  %v206_v53 = vpop.f32.mrb[0].mxu1 }
  0xf8   :  { %v204_v54 = vpop.f32.mrb[1].mxu0  ;;  %v207_v56 = vpop.f32.mrb[1].mxu1 }
  0xf9   :  { %v205_v57 = vadd.f32 %v204_v54, %v203_v52  ;;  %v208_v58 = vadd.f32 %v207_v56, %v206_v53 }
  0xfb   :  { %v150_v59 = vadd.f32 %v205_v57, %v170_v55  ;;  %v151_v60 = vadd.f32 %v208_v58, %v170_v55 }
  0xfd   :  { %152 = vst [vmem:[#allocation3] sm:$0xff] %v150_v59  ;;  %153 = vst [vmem:[#allocation3 + $0x8] sm:$0xff] %v151_v60 }
  0xfe   :  { %271 = shalt.err (!%p268_p4)
}
  0xff   :  { %s272_s8 = scalar_lea.hbm %s433_s3, 256 }
 0x100   :  { %p273_p5 = scmp.ne.s32.totalorder %s433_s3, %s272_s8  ;;  %p276_p6 = scmp.lt.u32.totalorder %s272_s8, %s433_s3 }
 0x102   :  { %p278_p7 = pnand %p276_p6, %p273_p5 }
 0x104   :  { %281 = shalt.err (!%p278_p7)
}
 0x105   :  { %s285_s12 = smov 128   ;;  %s286_s13 = smov 8  }
 0x106   :  { %165 = dma.vmem_to_hbm [thread:$0]  %s160_s30, 256, %s433_s3, [#allocation4], %s285_s12, %s285_s12, %s286_s13  }
 0x107   :  { %282 = dma.done.wait [#allocation4], 256  }
 0x108   :  { %283 = vsyncadd [#allocation4], 4294967040 }
 0x109   :  { %169 = vsyncpa [#allocation4], 1 }

</bundles_post_ra>
